<compile_context>
chip_gen: v6e
topology: v6e:2x2x1
jax: 0.10.0
libtpu: 0.0.40
codegen_flags: <defaults>
</compile_context>

<pallas_src>
import jax
import jax.numpy as jnp
import numpy as np
from jax.experimental import pallas as pl
from jax.experimental.pallas import tpu as pltpu

LANES = 128  # TPU lane width; rotor index = lane % num_rotors


def _cf_rotor_kernel(params_ref, cmds_ref, throttle_ref,
                     thrusts_ref, moments_ref, new_throttle_ref):
    # params_ref: (8, 128) stacked per-rotor constant rows (lane-tiled):
    #   row 0: decay_up, row 1: decay_down, row 2: KF, row 3: -KM*directions
    cmds = cmds_ref[...]          # (tile_rows, 128)
    throttle = throttle_ref[...]  # (tile_rows, 128)

    decay_up = params_ref[0:1, :]      # (1, 128), broadcasts over rows
    decay_down = params_ref[1:2, :]
    kf = params_ref[2:3, :]
    km_neg_dirs = params_ref[3:4, :]

    # target_throttle = f_inv(clamp((cmds + 1) / 2, 0, 1)) with f_inv = sqrt
    target = jnp.sqrt(jnp.clip((cmds + 1.0) * 0.5, 0.0, 1.0))

    # decay = exp(-dt / clip(tau, 0, 1)) precomputed on host; just select.
    decay = jnp.where(target > throttle, decay_up, decay_down)

    # first-order lag on throttle
    new_throttle = throttle * decay + (1.0 - decay) * target

    # t = clamp(f(throttle), 0, 1) with f = square  (noise term is exactly zero)
    t = jnp.clip(new_throttle * new_throttle, 0.0, 1.0)

    thrusts_ref[...] = t * kf
    moments_ref[...] = t * km_neg_dirs
    new_throttle_ref[...] = new_throttle


def cf_rotor_forward(cmds, throttle, kf, km, directions, tau_up, tau_down, dt):
    """Functional CFRotor.forward.

    cmds:     (N, R) float32, commands in [-1, 1]
    throttle: (N, R) float32, current throttle state
    returns (thrusts, moments, new_throttle), each (N, R) float32.
    """
    cmds = jnp.asarray(cmds, jnp.float32)
    throttle = jnp.asarray(throttle, jnp.float32)
    N, R = cmds.shape
    assert LANES % R == 0, "num_rotors must divide 128 for lane-dense packing"
    reps = LANES // R

    # ---- host-precomputed per-rotor constant rows (lane-tiled) ----------------
    tau_up_c = jnp.clip(jnp.asarray(tau_up, jnp.float32), 0.0, 1.0)
    tau_down_c = jnp.clip(jnp.asarray(tau_down, jnp.float32), 0.0, 1.0)
    decay_up = jnp.exp(-dt / tau_up_c)
    decay_down = jnp.exp(-dt / tau_down_c)
    kf_v = jnp.asarray(kf, jnp.float32)
    km_neg_dirs = -jnp.asarray(km, jnp.float32) * jnp.asarray(directions, jnp.float32)

    def lane_row(p):
        return jnp.tile(p.reshape(R), (reps,)).reshape(1, LANES)

    params = jnp.concatenate(
        [lane_row(decay_up), lane_row(decay_down),
         lane_row(kf_v), lane_row(km_neg_dirs),
         jnp.zeros((4, LANES), jnp.float32)],  # pad to 8 sublanes
        axis=0)                                 # (8, 128)

    # ---- lane-dense repack of the drone x rotor data --------------------------
    total = N * R
    rows = -(-total // LANES)                   # ceil
    if rows <= 512:
        tile_rows = max(8, ((rows + 7) // 8) * 8)
    else:
        tile_rows = 512
    rows_padded = ((rows + tile_rows - 1) // tile_rows) * tile_rows
    grid_n = rows_padded // tile_rows

    pad = rows_padded * LANES - total
    cmds_flat = jnp.pad(cmds.reshape(-1), (0, pad),
                        constant_values=-1.0).reshape(rows_padded, LANES)
    thr_flat = jnp.pad(throttle.reshape(-1), (0, pad),
                       constant_values=0.0).reshape(rows_padded, LANES)

    tile_spec = pl.BlockSpec((tile_rows, LANES), lambda i: (i, 0))
    param_spec = pl.BlockSpec((8, LANES), lambda i: (0, 0))

    thrusts_p, moments_p, new_thr_p = pl.pallas_call(
        _cf_rotor_kernel,
        grid=(grid_n,),
        in_specs=[param_spec, tile_spec, tile_spec],
        out_specs=(tile_spec, tile_spec, tile_spec),
        out_shape=(
            jax.ShapeDtypeStruct((rows_padded, LANES), jnp.float32),
            jax.ShapeDtypeStruct((rows_padded, LANES), jnp.float32),
            jax.ShapeDtypeStruct((rows_padded, LANES), jnp.float32),
        ),
        input_output_aliases={2: 2},  # donate throttle buffer -> new_throttle
        compiler_params=pltpu.CompilerParams(
            dimension_semantics=("parallel",)),
    )(params, cmds_flat, thr_flat)

    def unpack(x):
        return x.reshape(-1)[:total].reshape(N, R)

    return unpack(thrusts_p), unpack(moments_p), unpack(new_thr_p)


def cf_rotor_reference(cmds, throttle, kf, km, directions, tau_up, tau_down, dt):
    """Pure-JAX reference of the same math, for correctness checking."""
    target = jnp.sqrt(jnp.clip((cmds + 1.0) * 0.5, 0.0, 1.0))
    tau = jnp.where(target > throttle, tau_up[None, :], tau_down[None, :])
    tau = jnp.clip(tau, 0.0, 1.0)
    decay = jnp.exp(-dt / tau)
    new_throttle = throttle * decay + (1.0 - decay) * target
    t = jnp.clip(jnp.square(new_throttle), 0.0, 1.0)
    thrusts = t * kf[None, :]
    moments = t * km[None, :] * (-directions[None, :])
    return thrusts, moments, new_throttle


if __name__ == "__main__":
    # Deterministic "rotor_config" (crazyflie-like constants), built in-script.
    num_rotors = 4
    dt = 0.01
    force_constants = jnp.full((num_rotors,), 2.350347298350041e-08, jnp.float32)
    moment_constants = jnp.full((num_rotors,), 7.24e-10, jnp.float32)
    max_rot_vels = jnp.full((num_rotors,), 2315.0, jnp.float32)
    directions = jnp.array([1.0, -1.0, 1.0, -1.0], jnp.float32)

    KF = jnp.square(max_rot_vels) * force_constants
    KM = jnp.square(max_rot_vels) * moment_constants
    tau_up = jnp.full((num_rotors,), 0.0125, jnp.float32)
    tau_down = jnp.full((num_rotors,), 0.025, jnp.float32)

    fwd = jax.jit(cf_rotor_forward, static_argnames=("dt",))

    key = jax.random.PRNGKey(0)

    # --- small example: N = 8 drones, 4 rotors (single-block path) ------------
    N = 8
    k1, k2, key = jax.random.split(key, 3)
    cmds = jax.random.uniform(k1, (N, num_rotors), jnp.float32,
                              minval=-1.0, maxval=1.0)
    throttle0 = jax.random.uniform(k2, (N, num_rotors), jnp.float32,
                                   minval=0.0, maxval=1.0)

    thrusts, moments, new_throttle = fwd(
        cmds, throttle0, KF, KM, directions, tau_up, tau_down, dt=dt)
    jax.block_until_ready((thrusts, moments, new_throttle))

    r_thrusts, r_moments, r_throttle = cf_rotor_reference(
        cmds, throttle0, KF, KM, directions, tau_up, tau_down, dt)
    np.testing.assert_allclose(np.asarray(thrusts), np.asarray(r_thrusts),
                               rtol=1e-5, atol=1e-6)
    np.testing.assert_allclose(np.asarray(moments), np.asarray(r_moments),
                               rtol=1e-5, atol=1e-6)
    np.testing.assert_allclose(np.asarray(new_throttle), np.asarray(r_throttle),
                               rtol=1e-5, atol=1e-6)

    # --- larger example exercising the multi-tile grid + padding path ---------
    N_big = 16389  # rows = 513 -> tile_rows = 512, grid = 2, with padding
    k3, k4, _ = jax.random.split(key, 3)
    cmds_b = jax.random.uniform(k3, (N_big, num_rotors), jnp.float32,
                                minval=-1.0, maxval=1.0)
    throttle_b = jax.random.uniform(k4, (N_big, num_rotors), jnp.float32,
                                    minval=0.0, maxval=1.0)

    tb, mb, nb = fwd(cmds_b, throttle_b, KF, KM, directions,
                     tau_up, tau_down, dt=dt)
    jax.block_until_ready((tb, mb, nb))

    rtb, rmb, rnb = cf_rotor_reference(
        cmds_b, throttle_b, KF, KM, directions, tau_up, tau_down, dt)
    np.testing.assert_allclose(np.asarray(tb), np.asarray(rtb),
                               rtol=1e-5, atol=1e-6)
    np.testing.assert_allclose(np.asarray(mb), np.asarray(rmb),
                               rtol=1e-5, atol=1e-6)
    np.testing.assert_allclose(np.asarray(nb), np.asarray(rnb),
                               rtol=1e-5, atol=1e-6)

    print("KERNEL_OK")
</pallas_src>

<mosaic_0001>
module attributes {stable_mosaic.version = 11 : i64} {
  func.func @_cf_rotor_kernel(%arg0: i32, %arg1: memref<8x128xf32, #tpu.memory_space<vmem>>, %arg2: memref<8x128xf32, #tpu.memory_space<vmem>>, %arg3: memref<8x128xf32, #tpu.memory_space<vmem>>, %arg4: memref<8x128xf32, #tpu.memory_space<vmem>>, %arg5: memref<8x128xf32, #tpu.memory_space<vmem>>, %arg6: memref<8x128xf32, #tpu.memory_space<vmem>>) attributes {dimension_semantics = [#tpu.dimension_semantics<parallel>], iteration_bounds = array<i64: 1>, scalar_prefetch = 0 : i64, scratch_operands = 0 : i64, tpu.core_type = #tpu.core_type<tc>, window_params = [{pipeline_mode = #tpu.pipeline_mode<synchronous>, transform_indices = @transform_0, window_bounds = array<i64: 8, 128>}, {transform_indices = @transform_1, window_bounds = array<i64: 8, 128>}, {transform_indices = @transform_2, window_bounds = array<i64: 8, 128>}, {transform_indices = @transform_3, window_bounds = array<i64: 8, 128>}, {transform_indices = @transform_4, window_bounds = array<i64: 8, 128>}, {transform_indices = @transform_5, window_bounds = array<i64: 8, 128>}]} {
    %c0 = arith.constant 0 : index
    %c0_0 = arith.constant 0 : index
    %0 = vector.load %arg2[%c0, %c0_0] : memref<8x128xf32, #tpu.memory_space<vmem>>, vector<8x128xf32>
    %c0_1 = arith.constant 0 : index
    %c0_2 = arith.constant 0 : index
    %1 = vector.load %arg3[%c0_1, %c0_2] : memref<8x128xf32, #tpu.memory_space<vmem>>, vector<8x128xf32>
    %c0_3 = arith.constant 0 : index
    %c0_4 = arith.constant 0 : index
    %2 = vector.load %arg1[%c0_3, %c0_4] : memref<8x128xf32, #tpu.memory_space<vmem>>, vector<1x128xf32>
    %c1 = arith.constant 1 : index
    %c0_5 = arith.constant 0 : index
    %3 = vector.load %arg1[%c1, %c0_5] : memref<8x128xf32, #tpu.memory_space<vmem>>, vector<1x128xf32>
    %c2 = arith.constant 2 : index
    %c0_6 = arith.constant 0 : index
    %4 = vector.load %arg1[%c2, %c0_6] : memref<8x128xf32, #tpu.memory_space<vmem>>, vector<1x128xf32>
    %c3 = arith.constant 3 : index
    %c0_7 = arith.constant 0 : index
    %5 = vector.load %arg1[%c3, %c0_7] : memref<8x128xf32, #tpu.memory_space<vmem>>, vector<1x128xf32>
    %cst = arith.constant 1.000000e+00 : f32
    %6 = vector.broadcast %cst : f32 to vector<8x128xf32>
    %7 = arith.addf %0, %6 : vector<8x128xf32>
    %cst_8 = arith.constant 5.000000e-01 : f32
    %8 = vector.broadcast %cst_8 : f32 to vector<8x128xf32>
    %9 = arith.mulf %7, %8 : vector<8x128xf32>
    %cst_9 = arith.constant 0.000000e+00 : f32
    %cst_10 = arith.constant 1.000000e+00 : f32
    %10 = vector.broadcast %cst_9 : f32 to vector<8x128xf32>
    %11 = arith.maximumf %10, %9 : vector<8x128xf32>
    %12 = vector.broadcast %cst_10 : f32 to vector<8x128xf32>
    %13 = arith.minimumf %12, %11 : vector<8x128xf32>
    %14 = math.sqrt %13 : vector<8x128xf32>
    %15 = arith.cmpf ogt, %14, %1 : vector<8x128xf32>
    %16 = vector.shape_cast %2 : vector<1x128xf32> to vector<1x128xf32>
    %17 = vector.broadcast %16 : vector<1x128xf32> to vector<8x128xf32>
    %18 = vector.shape_cast %3 : vector<1x128xf32> to vector<1x128xf32>
    %19 = vector.broadcast %18 : vector<1x128xf32> to vector<8x128xf32>
    %20 = arith.select %15, %17, %19 : vector<8x128xi1>, vector<8x128xf32>
    %21 = arith.mulf %1, %20 : vector<8x128xf32>
    %cst_11 = arith.constant 1.000000e+00 : f32
    %22 = vector.broadcast %cst_11 : f32 to vector<8x128xf32>
    %23 = arith.subf %22, %20 : vector<8x128xf32>
    %24 = arith.mulf %23, %14 : vector<8x128xf32>
    %25 = arith.addf %21, %24 : vector<8x128xf32>
    %26 = arith.mulf %25, %25 : vector<8x128xf32>
    %cst_12 = arith.constant 0.000000e+00 : f32
    %cst_13 = arith.constant 1.000000e+00 : f32
    %27 = vector.broadcast %cst_12 : f32 to vector<8x128xf32>
    %28 = arith.maximumf %27, %26 : vector<8x128xf32>
    %29 = vector.broadcast %cst_13 : f32 to vector<8x128xf32>
    %30 = arith.minimumf %29, %28 : vector<8x128xf32>
    %31 = vector.broadcast %4 : vector<1x128xf32> to vector<8x128xf32>
    %32 = arith.mulf %30, %31 : vector<8x128xf32>
    %c0_14 = arith.constant 0 : index
    %c0_15 = arith.constant 0 : index
    %33 = vector.load %arg4[%c0_14, %c0_15] : memref<8x128xf32, #tpu.memory_space<vmem>>, vector<8x128xf32>
    tpu.vector_store %arg4[%c0_14, %c0_15], %32 {strides = array<i32>} : memref<8x128xf32, #tpu.memory_space<vmem>>, vector<8x128xf32>,
    %34 = vector.broadcast %5 : vector<1x128xf32> to vector<8x128xf32>
    %35 = arith.mulf %30, %34 : vector<8x128xf32>
    %c0_16 = arith.constant 0 : index
    %c0_17 = arith.constant 0 : index
    %36 = vector.load %arg5[%c0_16, %c0_17] : memref<8x128xf32, #tpu.memory_space<vmem>>, vector<8x128xf32>
    tpu.vector_store %arg5[%c0_16, %c0_17], %35 {strides = array<i32>} : memref<8x128xf32, #tpu.memory_space<vmem>>, vector<8x128xf32>,
    %c0_18 = arith.constant 0 : index
    %c0_19 = arith.constant 0 : index
    %37 = vector.load %arg6[%c0_18, %c0_19] : memref<8x128xf32, #tpu.memory_space<vmem>>, vector<8x128xf32>
    tpu.vector_store %arg6[%c0_18, %c0_19], %25 {strides = array<i32>} : memref<8x128xf32, #tpu.memory_space<vmem>>, vector<8x128xf32>,
    return
  }
  func.func @transform_0(%arg0: i32) -> (i32, i32) {
    %c0_i32 = arith.constant 0 : i32
    %c0_i32_0 = arith.constant 0 : i32
    %c0_i32_1 = arith.constant 0 : i32
    return %c0_i32, %c0_i32_0 : i32, i32
  }
  func.func @transform_1(%arg0: i32) -> (i32, i32) {
    %c0_i32 = arith.constant 0 : i32
    %c0_i32_0 = arith.constant 0 : i32
    return %arg0, %c0_i32 : i32, i32
  }
  func.func @transform_2(%arg0: i32) -> (i32, i32) {
    %c0_i32 = arith.constant 0 : i32
    %c0_i32_0 = arith.constant 0 : i32
    return %arg0, %c0_i32 : i32, i32
  }
  func.func @transform_3(%arg0: i32) -> (i32, i32) {
    %c0_i32 = arith.constant 0 : i32
    %c0_i32_0 = arith.constant 0 : i32
    return %arg0, %c0_i32 : i32, i32
  }
  func.func @transform_4(%arg0: i32) -> (i32, i32) {
    %c0_i32 = arith.constant 0 : i32
    %c0_i32_0 = arith.constant 0 : i32
    return %arg0, %c0_i32 : i32, i32
  }
  func.func @transform_5(%arg0: i32) -> (i32, i32) {
    %c0_i32 = arith.constant 0 : i32
    %c0_i32_0 = arith.constant 0 : i32
    return %arg0, %c0_i32 : i32, i32
  }
}

</mosaic_0001>

<bundles_post_ra>
// kernel: tile.23
= control target key start
LH: loop header
LB: loop body
LE: loop exit
PB: predicated region body
PF: predicated region fallthrough
CT: control target
= control target key end

     0   :  { %s40_s0 = inlined_call_operand.vmem [shape: f32[4], index: 0, kind: input, shape index: {}]   ;;  %s41_s1 = inlined_call_operand.vmem [shape: f32[32,4], index: 1, kind: output, shape index: {}]  }
   0x1   :  { %v4_v0 = vld [vmem:[%s40_s0] ss:$0 sm:$0xff] }
   0x2   :  { %5 = vst [vmem:[%s41_s1] sm:$0xff] %v4_v0  ;;  %12 = vst [vmem:[%s41_s1 + $0x8] sm:$0xff] %v4_v0 }
   0x3   :  { %13 = vst [vmem:[%s41_s1 + $0x10] sm:$0xff] %v4_v0  ;;  %14 = vst [vmem:[%s41_s1 + $0x18] sm:$0xff] %v4_v0 }

// kernel: tile.24
= control target key start
LH: loop header
LB: loop body
LE: loop exit
PB: predicated region body
PF: predicated region fallthrough
CT: control target
= control target key end

     0   :  { %s261_s10 = smov 124   ;;  %s262_s11 = smov 116   ;;  %vm3_vm0 = vcmask 31744   ;;  %vm9_vm1 = vcmask 1048544   ;;  %vm15_vm2 = vcmask 1015744   ;;  %vm21_vm3 = vcmask 982944   ;;  %s401_s0 = inlined_call_operand.vmem [shape: f32[32,4], index: 0, kind: input, shape index: {}]   ;;  %s402_s1 = inlined_call_operand.vmem [shape: f32[1,128], index: 1, kind: output, shape index: {}]  }
   0x1   :  { %v199_v0 = vld [vmem:[%s401_s0 + $0x1f] sm:$0x1]   ;;  %v201_v1 = vld [vmem:[%s401_s0 + $0x1d] sm:$0x1]   ;;  %v200_v2 = vld [vmem:[%s401_s0 + $0x1e] sm:$0x1]  }
   0x2   :  { %7 = vrot.lane.b32.xlu0 %v199_v0, %s261_s10  ;;  %19 = vrot.lane.b32.xlu1 %v201_v1, %s262_s11  ;;  %v202_v3 = vld [vmem:[%s401_s0 + $0x1c] sm:$0x1]   ;;  %s263_s16 = smov 120   ;;  %s264_s17 = smov 112   ;;  %v203_v4 = vld [vmem:[%s401_s0 + $0x1b] sm:$0x1]  }
   0x3   :  { %v204_v5 = vld [vmem:[%s401_s0 + $0x1a] sm:$0x1]   ;;  %s265_s22 = smov 108   ;;  %s266_s23 = smov 104   ;;  %v205_v6 = vld [vmem:[%s401_s0 + $0x19] sm:$0x1]  }
   0x4   :  { %v206_v7 = vld [vmem:[%s401_s0 + $0x18] sm:$0x1]   ;;  %s267_s28 = smov 100   ;;  %s268_s29 = smov 96   ;;  %v207_v8 = vld [vmem:[%s401_s0 + $0x17] sm:$0x1]  }
   0x5   :  { %v208_v9 = vld [vmem:[%s401_s0 + $0x16] sm:$0x1]   ;;  %v2_v10 = vld [vmem:[%s401_s0] sm:$0x1]   ;;  %s269_s7 = smov 92   ;;  %s270_s8 = smov 88  }
   0x6   :  { %13 = vrot.lane.b32.xlu0 %v200_v2, %s263_s16  ;;  %25 = vrot.lane.b32.xlu1 %v202_v3, %s264_s17  ;;  %4 = vst.msk [vmem:[#allocation0] sm:$0x1] %vm3_vm0, %v2_v10   ;;  %v209_v11 = vld [vmem:[%s401_s0 + $0x15] sm:$0x1]   ;;  %v210_v12 = vld [vmem:[%s401_s0 + $0x14] sm:$0x1]  }
   0x7   :  { %s271_s13 = smov 84   ;;  %s272_s14 = smov 80   ;;  %v211_v13 = vld [vmem:[%s401_s0 + $0x13] sm:$0x1]   ;;  %v212_v14 = vld [vmem:[%s401_s0 + $0x12] sm:$0x1]  }
   0x8   :  { %s273_s19 = smov 76   ;;  %s274_s20 = smov 72   ;;  %v213_v15 = vld [vmem:[%s401_s0 + $0x11] sm:$0x1]   ;;  %v214_v16 = vld [vmem:[%s401_s0 + $0x10] sm:$0x1]  }
   0x9   :  { %s275_s25 = smov 68   ;;  %s276_s26 = smov 64   ;;  %v215_v17 = vld [vmem:[%s401_s0 + $0xf] sm:$0x1]   ;;  %v216_v18 = vld [vmem:[%s401_s0 + $0xe] sm:$0x1]  }
   0xa   :  { %31 = vrot.lane.b32.xlu0 %v203_v4, %s265_s22  ;;  %37 = vrot.lane.b32.xlu1 %v204_v5, %s266_s23  ;;  %s277_s2 = smov 60   ;;  %s278_s3 = smov 56   ;;  %v217_v19 = vld [vmem:[%s401_s0 + $0xd] sm:$0x1]   ;;  %v218_v20 = vld [vmem:[%s401_s0 + $0xc] sm:$0x1]  }
   0xb   :  { %s280_s9 = smov 48   ;;  %v219_v21 = vld [vmem:[%s401_s0 + $0xb] sm:$0x1]   ;;  %v220_v22 = vld [vmem:[%s401_s0 + $0xa] sm:$0x1]   ;;  %s282_s15 = smov 40  }
   0xc   :  { %v221_v23 = vld [vmem:[%s401_s0 + $0x9] sm:$0x1]   ;;  %v222_v24 = vld [vmem:[%s401_s0 + $0x8] sm:$0x1]   ;;  %s284_s21 = smov 32   ;;  %s286_s27 = smov 24  }
   0xd   :  { %v223_v25 = vld [vmem:[%s401_s0 + $0x7] sm:$0x1]   ;;  %v224_v26 = vld [vmem:[%s401_s0 + $0x6] sm:$0x1]   ;;  %v225_v27 = vld [vmem:[%s401_s0 + $0x5] sm:$0x1]  }
   0xe   :  { %43 = vrot.lane.b32.xlu0 %v205_v6, %s267_s28  ;;  %49 = vrot.lane.b32.xlu1 %v206_v7, %s268_s29  ;;  %v226_v28 = vld [vmem:[%s401_s0 + $0x4] sm:$0x1]   ;;  %s288_s4 = smov 16   ;;  %v227_v29 = vld [vmem:[%s401_s0 + $0x3] sm:$0x1]   ;;  %s290_s10 = smov 8  }
   0xf   :  { %v228_v30 = vld [vmem:[%s401_s0 + $0x2] sm:$0x1]   ;;  %v229_v31 = vld [vmem:[%s401_s0 + $0x1] sm:$0x1]   ;;  %s291_s0 = smov 4   ;;  %vm27_vm4 = vcmask 950144  }
  0x10   :  { %vm33_vm5 = vcmask 917344   ;;  %vm39_vm6 = vcmask 884544   ;;  %vm45_vm7 = vcmask 851744   ;;  %vm51_vm8 = vcmask 818944  }
  0x11   :  { %vm57_vm9 = vcmask 786144   ;;  %vm63_vm10 = vcmask 753344   ;;  %vm69_vm11 = vcmask 720544   ;;  %vm75_vm12 = vcmask 687744  }
  0x12   :  { %55 = vrot.lane.b32.xlu0 %v207_v8, %s269_s7  ;;  %61 = vrot.lane.b32.xlu1 %v208_v9, %s270_s8  ;;  %s279_s8 = smov 52   ;;  %vm81_vm13 = vcmask 654944   ;;  %vm87_vm14 = vcmask 622144   ;;  %vm93_vm15 = vcmask 589344   ;;  %vm99_vm0 = vcmask 556544  }
  0x16   :  { %67 = vrot.lane.b32.xlu0 %v209_v11, %s271_s13  ;;  %73 = vrot.lane.b32.xlu1 %v210_v12, %s272_s14  ;;  %s281_s14 = smov 44  }
  0x1a   :  { %79 = vrot.lane.b32.xlu0 %v211_v13, %s273_s19  ;;  %85 = vrot.lane.b32.xlu1 %v212_v14, %s274_s20  ;;  %s283_s20 = smov 36  }
  0x1e   :  { %91 = vrot.lane.b32.xlu0 %v213_v15, %s275_s25  ;;  %97 = vrot.lane.b32.xlu1 %v214_v16, %s276_s26  ;;  %s285_s26 = smov 28  }
  0x22   :  { %103 = vrot.lane.b32.xlu0 %v215_v17, %s277_s2  ;;  %109 = vrot.lane.b32.xlu1 %v216_v18, %s278_s3  ;;  %s287_s3 = smov 20  }
  0x26   :  { %115 = vrot.lane.b32.xlu0 %v217_v19, %s279_s8  ;;  %121 = vrot.lane.b32.xlu1 %v218_v20, %s280_s9  ;;  %s289_s9 = smov 12  }
  0x2a   :  { %127 = vrot.lane.b32.xlu0 %v219_v21, %s281_s14  ;;  %133 = vrot.lane.b32.xlu1 %v220_v22, %s282_s15 }
  0x2e   :  { %139 = vrot.lane.b32.xlu0 %v221_v23, %s283_s20  ;;  %145 = vrot.lane.b32.xlu1 %v222_v24, %s284_s21 }
  0x32   :  { %151 = vrot.lane.b32.xlu0 %v223_v25, %s285_s26  ;;  %157 = vrot.lane.b32.xlu1 %v224_v26, %s286_s27 }
  0x36   :  { %163 = vrot.lane.b32.xlu0 %v225_v27, %s287_s3  ;;  %169 = vrot.lane.b32.xlu1 %v226_v28, %s288_s4 }
  0x3a   :  { %175 = vrot.lane.b32.xlu0 %v227_v29, %s289_s9  ;;  %181 = vrot.lane.b32.xlu1 %v228_v30, %s290_s10 }
  0x3e   :  { %187 = vrot.lane.b32.xlu0 %v229_v31, %s291_s0 }
  0x74   :  { %v8_v32 = vpop.permute.xlu0 %7   ;;  %v20_v33 = vpop.permute.xlu1 %19  }
  0x75   :  { %10 = vst.msk [vmem:[#allocation0] sm:$0x1] %vm9_vm1, %v8_v32   ;;  %vm105_vm1 = vcmask 523744  }
  0x78   :  { %v14_v34 = vpop.permute.xlu0 %13   ;;  %v26_v35 = vpop.permute.xlu1 %25  }
  0x79   :  { %16 = vst.msk [vmem:[#allocation0] sm:$0x1] %vm15_vm2, %v14_v34   ;;  %vm111_vm2 = vcmask 490944  }
  0x7a   :  { %22 = vst.msk [vmem:[#allocation0] sm:$0x1] %vm21_vm3, %v20_v33   ;;  %vm117_vm3 = vcmask 458144  }
  0x7b   :  { %28 = vst.msk [vmem:[#allocation0] sm:$0x1] %vm27_vm4, %v26_v35   ;;  %vm123_vm4 = vcmask 425344  }
  0x7c   :  { %v32_v36 = vpop.permute.xlu0 %31   ;;  %v38_v37 = vpop.permute.xlu1 %37  }
  0x7d   :  { %34 = vst.msk [vmem:[#allocation0] sm:$0x1] %vm33_vm5, %v32_v36   ;;  %vm129_vm5 = vcmask 392544  }
  0x7e   :  { %40 = vst.msk [vmem:[#allocation0] sm:$0x1] %vm39_vm6, %v38_v37   ;;  %vm135_vm6 = vcmask 359744  }
  0x80   :  { %v44_v38 = vpop.permute.xlu0 %43   ;;  %v50_v39 = vpop.permute.xlu1 %49  }
  0x81   :  { %46 = vst.msk [vmem:[#allocation0] sm:$0x1] %vm45_vm7, %v44_v38   ;;  %vm141_vm7 = vcmask 326944  }
  0x82   :  { %52 = vst.msk [vmem:[#allocation0] sm:$0x1] %vm51_vm8, %v50_v39   ;;  %vm147_vm8 = vcmask 294144  }
  0x84   :  { %v56_v40 = vpop.permute.xlu0 %55   ;;  %v62_v41 = vpop.permute.xlu1 %61  }
  0x85   :  { %58 = vst.msk [vmem:[#allocation0] sm:$0x1] %vm57_vm9, %v56_v40   ;;  %vm153_vm9 = vcmask 261344  }
  0x86   :  { %64 = vst.msk [vmem:[#allocation0] sm:$0x1] %vm63_vm10, %v62_v41   ;;  %vm159_vm10 = vcmask 228544  }
  0x88   :  { %v68_v42 = vpop.permute.xlu0 %67   ;;  %v74_v43 = vpop.permute.xlu1 %73  }
  0x89   :  { %70 = vst.msk [vmem:[#allocation0] sm:$0x1] %vm69_vm11, %v68_v42   ;;  %vm165_vm11 = vcmask 195744  }
  0x8a   :  { %76 = vst.msk [vmem:[#allocation0] sm:$0x1] %vm75_vm12, %v74_v43   ;;  %vm171_vm12 = vcmask 162944  }
  0x8c   :  { %v80_v44 = vpop.permute.xlu0 %79   ;;  %v86_v45 = vpop.permute.xlu1 %85  }
  0x8d   :  { %82 = vst.msk [vmem:[#allocation0] sm:$0x1] %vm81_vm13, %v80_v44   ;;  %vm177_vm13 = vcmask 130144  }
  0x8e   :  { %88 = vst.msk [vmem:[#allocation0] sm:$0x1] %vm87_vm14, %v86_v45   ;;  %vm183_vm14 = vcmask 97344  }
  0x90   :  { %v92_v46 = vpop.permute.xlu0 %91   ;;  %v98_v47 = vpop.permute.xlu1 %97  }
  0x91   :  { %94 = vst.msk [vmem:[#allocation0] sm:$0x1] %vm93_vm15, %v92_v46   ;;  %vm189_vm15 = vcmask 64544  }
  0x92   :  { %100 = vst.msk [vmem:[#allocation0] sm:$0x1] %vm99_vm0, %v98_v47  }
  0x94   :  { %v104_v48 = vpop.permute.xlu0 %103   ;;  %v110_v49 = vpop.permute.xlu1 %109  }
  0x95   :  { %106 = vst.msk [vmem:[#allocation0] sm:$0x1] %vm105_vm1, %v104_v48  }
  0x96   :  { %112 = vst.msk [vmem:[#allocation0] sm:$0x1] %vm111_vm2, %v110_v49  }
  0x98   :  { %v116_v50 = vpop.permute.xlu0 %115   ;;  %v122_v51 = vpop.permute.xlu1 %121  }
  0x99   :  { %118 = vst.msk [vmem:[#allocation0] sm:$0x1] %vm117_vm3, %v116_v50  }
  0x9a   :  { %124 = vst.msk [vmem:[#allocation0] sm:$0x1] %vm123_vm4, %v122_v51  }
  0x9c   :  { %v128_v52 = vpop.permute.xlu0 %127   ;;  %v134_v53 = vpop.permute.xlu1 %133  }
  0x9d   :  { %130 = vst.msk [vmem:[#allocation0] sm:$0x1] %vm129_vm5, %v128_v52  }
  0x9e   :  { %136 = vst.msk [vmem:[#allocation0] sm:$0x1] %vm135_vm6, %v134_v53  }
  0xa0   :  { %v140_v54 = vpop.permute.xlu0 %139   ;;  %v146_v55 = vpop.permute.xlu1 %145  }
  0xa1   :  { %142 = vst.msk [vmem:[#allocation0] sm:$0x1] %vm141_vm7, %v140_v54  }
  0xa2   :  { %148 = vst.msk [vmem:[#allocation0] sm:$0x1] %vm147_vm8, %v146_v55  }
  0xa4   :  { %v152_v56 = vpop.permute.xlu0 %151   ;;  %v158_v57 = vpop.permute.xlu1 %157  }
  0xa5   :  { %154 = vst.msk [vmem:[#allocation0] sm:$0x1] %vm153_vm9, %v152_v56  }
  0xa6   :  { %160 = vst.msk [vmem:[#allocation0] sm:$0x1] %vm159_vm10, %v158_v57  }
  0xa8   :  { %v164_v58 = vpop.permute.xlu0 %163   ;;  %v170_v59 = vpop.permute.xlu1 %169  }
  0xa9   :  { %166 = vst.msk [vmem:[#allocation0] sm:$0x1] %vm165_vm11, %v164_v58  }
  0xaa   :  { %172 = vst.msk [vmem:[#allocation0] sm:$0x1] %vm171_vm12, %v170_v59  }
  0xac   :  { %v176_v60 = vpop.permute.xlu0 %175   ;;  %v182_v61 = vpop.permute.xlu1 %181  }
  0xad   :  { %178 = vst.msk [vmem:[#allocation0] sm:$0x1] %vm177_vm13, %v176_v60  }
  0xae   :  { %184 = vst.msk [vmem:[#allocation0] sm:$0x1] %vm183_vm14, %v182_v61  }
  0xb0   :  { %v188_v62 = vpop.permute.xlu0 %187  }
  0xb1   :  { %190 = vst.msk [vmem:[#allocation0] sm:$0x1] %vm189_vm15, %v188_v62  }
  0xb8   :  { %v195_v63 = vld [vmem:[#allocation0] sm:$0x1] }
  0xb9   :  { %198 = vst [vmem:[%s402_s1] sm:$0x1] %v195_v63 }

// kernel: cf_rotor_forward.1
= control target key start
LH: loop header
LB: loop body
LE: loop exit
PB: predicated region body
PF: predicated region fallthrough
CT: control target
= control target key end

     0   :  { %s139_s1 = inlined_call_operand.vmem [shape: f32[8,128], index: 1, kind: input, shape index: {}]   ;;  %s140_s2 = inlined_call_operand.vmem [shape: f32[8,128], index: 2, kind: input, shape index: {}, may-alias: {2,5}]   ;;  %s141_s0 = inlined_call_operand.vmem [shape: f32[8,128], index: 0, kind: input, shape index: {}]   ;;  %s142_s5 = inlined_call_operand.vmem [shape: f32[8,128], index: 5, kind: output, shape index: {2}, may-alias: {2,5}]   ;;  %s143_s3 = inlined_call_operand.vmem [shape: f32[8,128], index: 3, kind: output, shape index: {0}]   ;;  %s144_s4 = inlined_call_operand.vmem [shape: f32[8,128], index: 4, kind: output, shape index: {1}]  }
   0x1   :  { %v17_v0 = vld [vmem:[%s139_s1] sm:$0xff] }
   0x2   :  { %v23_v1 = vadd.f32 1.0, %v17_v0  ;;  %v18_v8 = vld [vmem:[%s140_s2] sm:$0xff] }
   0x3   :  { %v76_v9 = vld [vmem:[%s141_s0] ss:$0 sm:$0xff]  ;;  %v77_v10 = vld [vmem:[%s141_s0 + $0x1] ss:$0 sm:$0xff]  ;;  %v78_v20 = vld [vmem:[%s141_s0 + $0x2] ss:$0 sm:$0xff] }
   0x4   :  { %v24_v2 = vmul.f32 0.5, %v23_v1  ;;  %v79_v21 = vld [vmem:[%s141_s0 + $0x3] ss:$0 sm:$0xff] }
   0x6   :  { %v25_v3 = vmax.f32 %v24_v2, 0.0 }
   0x8   :  { %v26_v4 = vmin.f32 %v25_v3, 1.0 }
   0xa   :  { %80 = vrsqrt.f32 %v26_v4  ;;  %vm29_vm0 = vcmp.eq.f32.partialorder %v26_v4, inf  ;;  %v32_v6 = vand.u32 2147483648, %v26_v4  ;;  %vm31_vm1 = vcmp.eq.f32.partialorder %v26_v4, 0.0 }
  0x17   :  { %v81_v5 = vpop.eup %80 }
  0x18   :  { %v28_v7 = vmul.f32 %v81_v5, %v26_v4 }
  0x1a   :  { %v30_v11 = vsel %vm29_vm0, %v26_v4, %v28_v7 }
  0x1b   :  { %v33_v12 = vsel %vm31_vm1, %v32_v6, %v30_v11 }
  0x1c   :  { %vm34_vm2 = vcmp.gt.f32.partialorder %v33_v12, %v18_v8 }
  0x1d   :  { %v43_v13 = vsel %vm34_vm2, %v76_v9, %v77_v10 }
  0x1e   :  { %v44_v14 = vmul.f32 %v43_v13, %v18_v8  ;;  %v45_v15 = vsub.f32 1.0, %v43_v13 }
  0x20   :  { %v46_v16 = vmul.f32 %v45_v15, %v33_v12 }
  0x22   :  { %v47_v17 = vadd.f32 %v46_v16, %v44_v14 }
  0x24   :  { %v48_v18 = vmul.f32 %v47_v17, %v47_v17  ;;  %63 = vst [vmem:[%s142_s5] sm:$0xff] %v47_v17 }
  0x26   :  { %v49_v19 = vmax.f32 %v48_v18, 0.0 }
  0x28   :  { %v50_v22 = vmin.f32 %v49_v19, 1.0 }
  0x2a   :  { %v55_v23 = vmul.f32 %v78_v20, %v50_v22  ;;  %v61_v24 = vmul.f32 %v79_v21, %v50_v22 }
  0x2c   :  { %56 = vst [vmem:[%s143_s3] sm:$0xff] %v55_v23  ;;  %62 = vst [vmem:[%s144_s4] sm:$0xff] %v61_v24 }

</bundles_post_ra>
